<compile_context>
chip_gen: v7x
topology: tpu7x:2x2x1
jax: 0.10.0
libtpu: 0.0.40
codegen_flags: <defaults>
</compile_context>

<pallas_src>
import math

import jax
import jax.numpy as jnp
from jax.experimental import pallas as pl
from jax.experimental.pallas import tpu as pltpu


# ----------------------------------------------------------------------------
# Fused kernel: out_i = x_i + pe[pe_index[i]]   (broadcast over batch rows)
# ----------------------------------------------------------------------------
def _choose_block_rows(b_rows: int, bytes_per_row: int, budget: int = 8 << 20) -> int:
    """Pick a batch-tile size: full batch when small, else a multiple of 8
    rows capped so one pipeline stage stays within ~8 MiB (safe for v7x)."""
    if b_rows <= 8:
        return b_rows
    tb = max(1, budget // max(bytes_per_row, 1))
    if tb >= b_rows:
        return b_rows
    return max(8, (tb // 8) * 8)


def fused_add_pe(xs, pe_slabs, pe_index):
    """xs: list of [B, S_i, D] arrays; pe_slabs: list of unique [1, S_j*D]
    PE slabs (already cast to xs dtype); pe_index[i] -> slab used by xs[i].
    Returns list of x_i + pe broadcast over B, same shapes/dtypes as xs."""
    n = len(xs)
    B, _, D = xs[0].shape
    dtype = xs[0].dtype
    for x in xs:
        assert x.shape[0] == B and x.shape[2] == D and x.dtype == dtype

    # Lane-dense 2-D views: [B, S_i * D]
    flat_xs = [x.reshape(B, x.shape[1] * D) for x in xs]
    widths = [fx.shape[1] for fx in flat_xs]

    itemsize = jnp.dtype(dtype).itemsize
    bytes_per_row = 2 * sum(widths) * itemsize          # read x + write out per batch row
    tb = _choose_block_rows(B, bytes_per_row)
    nb = pl.cdiv(B, tb)

    n_pe = len(pe_slabs)

    def kernel(*refs):
        x_refs = refs[:n]
        p_refs = refs[n:n + n_pe]
        o_refs = refs[n + n_pe:]
        for i in range(n):  # unrolled at trace time (n is 3 or 4)
            o_refs[i][...] = x_refs[i][...] + p_refs[pe_index[i]][...]

    in_specs = (
        [pl.BlockSpec((tb, w), lambda b: (b, 0)) for w in widths]
        + [pl.BlockSpec((1, p.shape[1]), lambda b: (0, 0)) for p in pe_slabs]
    )
    out_specs = tuple(pl.BlockSpec((tb, w), lambda b: (b, 0)) for w in widths)
    out_shape = tuple(jax.ShapeDtypeStruct((B, w), dtype) for w in widths)

    outs = pl.pallas_call(
        kernel,
        out_shape=out_shape,
        grid=(nb,),
        in_specs=in_specs,
        out_specs=out_specs,
        compiler_params=pltpu.CompilerParams(
            dimension_semantics=("parallel",),
        ),
    )(*flat_xs, *pe_slabs)

    return [o.reshape(x.shape) for o, x in zip(outs, xs)]


# ----------------------------------------------------------------------------
# PE table (same formula as the PyTorch module)
# ----------------------------------------------------------------------------
def make_pe(d_model: int, max_len: int = 5000) -> jax.Array:
    """Deterministic sinusoidal PE table, shape [1, max_len, d_model], f32."""
    position = jnp.arange(max_len, dtype=jnp.float32)[:, None]                  # [max_len, 1]
    div_term = jnp.exp(
        jnp.arange(0, d_model, 2, dtype=jnp.float32) * (-math.log(10000.0) / d_model)
    )                                                                            # [d_model//2]
    pe = jnp.zeros((1, max_len, d_model), dtype=jnp.float32)
    pe = pe.at[0, :, 0::2].set(jnp.sin(position * div_term))
    pe = pe.at[0, :, 1::2].set(jnp.cos(position * div_term))
    return pe


class SlotMAEPE:
    """JAX/Pallas port of pcdt.model.trajnet_a.SlotMAEPE (functional: returns
    new arrays instead of in-place +=, same values)."""

    def __init__(self, d_model: int, max_len: int = 5000):
        self.d_model = d_model
        self.max_len = max_len
        self.pe = make_pe(d_model, max_len)        # [1, max_len, d_model] f32 (reference layout)
        self._pe_2d = self.pe[0]                   # [max_len, d_model]
        self._slab_cache = {}                      # (start, length, dtype) -> [1, length*d_model]

    def _pe_slab(self, start: int, length: int, dtype) -> jax.Array:
        key = (start, length, jnp.dtype(dtype).name)
        if key not in self._slab_cache:
            assert start + length <= self.max_len, (
                f"PE table too short: need {start + length}, have {self.max_len}")
            slab = (self._pe_2d[start:start + length]
                    .astype(dtype)
                    .reshape(1, length * self.d_model))
            self._slab_cache[key] = slab
        return self._slab_cache[key]

    def __call__(self, slots, observations, actions, goal=None):
        assert observations.shape[1] == actions.shape[1]
        Ls = slots.shape[1]
        Lo = observations.shape[1]
        La = actions.shape[1]
        dtype = slots.dtype

        if goal is not None:
            Lg = goal.shape[1]
            xs = [slots, goal, observations, actions]
            segs = [(0, Ls), (Ls, Lg), (Ls + Lg, Lo), (Ls + Lg, La)]
        else:
            xs = [slots, observations, actions]
            segs = [(0, Ls), (Ls, Lo), (Ls, La)]

        # Dedupe PE slices (observations & actions share the same slice).
        uniq = {}
        pe_slabs = []
        pe_index = []
        for seg in segs:
            if seg not in uniq:
                uniq[seg] = len(pe_slabs)
                pe_slabs.append(self._pe_slab(seg[0], seg[1], dtype))
            pe_index.append(uniq[seg])

        outs = fused_add_pe(xs, pe_slabs, pe_index)
        return tuple(outs)


# ----------------------------------------------------------------------------
# Demo / correctness check
# ----------------------------------------------------------------------------
if __name__ == "__main__":
    key = jax.random.PRNGKey(0)
    B, D = 2, 32
    L_slots, L_goal, L_obs = 4, 2, 8     # seq lens (obs == actions per the assert)
    max_len = 64

    k1, k2, k3, k4 = jax.random.split(key, 4)
    slots = jax.random.normal(k1, (B, L_slots, D), dtype=jnp.float32)
    observations = jax.random.normal(k2, (B, L_obs, D), dtype=jnp.float32)
    actions = jax.random.normal(k3, (B, L_obs, D), dtype=jnp.float32)
    goal = jax.random.normal(k4, (B, L_goal, D), dtype=jnp.float32)

    module = SlotMAEPE(d_model=D, max_len=max_len)

    # ---- with goal ----
    s_o, g_o, o_o, a_o = module(slots, observations, actions, goal)
    jax.block_until_ready((s_o, g_o, o_o, a_o))

    # ---- without goal ----
    s2, o2, a2 = module(slots, observations, actions)
    jax.block_until_ready((s2, o2, a2))

    # pure-JAX reference check
    pe = module.pe
    ref_s = slots + pe[:, :L_slots]
    ref_g = goal + pe[:, L_slots:L_slots + L_goal]
    ref_o = observations + pe[:, L_slots + L_goal:L_slots + L_goal + L_obs]
    ref_a = actions + pe[:, L_slots + L_goal:L_slots + L_goal + L_obs]
    assert jnp.allclose(s_o, ref_s, atol=1e-6)
    assert jnp.allclose(g_o, ref_g, atol=1e-6)
    assert jnp.allclose(o_o, ref_o, atol=1e-6)
    assert jnp.allclose(a_o, ref_a, atol=1e-6)

    ref_s2 = slots + pe[:, :L_slots]
    ref_o2 = observations + pe[:, L_slots:L_slots + L_obs]
    ref_a2 = actions + pe[:, L_slots:L_slots + L_obs]
    assert jnp.allclose(s2, ref_s2, atol=1e-6)
    assert jnp.allclose(o2, ref_o2, atol=1e-6)
    assert jnp.allclose(a2, ref_a2, atol=1e-6)

    print("KERNEL_OK")
</pallas_src>

<mosaic_0001>
module attributes {stable_mosaic.version = 11 : i64} {
  func.func @kernel(%arg0: i32, %arg1: memref<2x128xf32, #tpu.memory_space<vmem>>, %arg2: memref<2x64xf32, #tpu.memory_space<vmem>>, %arg3: memref<2x256xf32, #tpu.memory_space<vmem>>, %arg4: memref<2x256xf32, #tpu.memory_space<vmem>>, %arg5: memref<1x128xf32, #tpu.memory_space<vmem>>, %arg6: memref<1x64xf32, #tpu.memory_space<vmem>>, %arg7: memref<1x256xf32, #tpu.memory_space<vmem>>, %arg8: memref<2x128xf32, #tpu.memory_space<vmem>>, %arg9: memref<2x64xf32, #tpu.memory_space<vmem>>, %arg10: memref<2x256xf32, #tpu.memory_space<vmem>>, %arg11: memref<2x256xf32, #tpu.memory_space<vmem>>) attributes {dimension_semantics = [#tpu.dimension_semantics<parallel>], iteration_bounds = array<i64: 1>, scalar_prefetch = 0 : i64, scratch_operands = 0 : i64, tpu.core_type = #tpu.core_type<tc>, window_params = [{transform_indices = @transform_0, window_bounds = array<i64: 2, 128>}, {transform_indices = @transform_1, window_bounds = array<i64: 2, 64>}, {transform_indices = @transform_2, window_bounds = array<i64: 2, 256>}, {transform_indices = @transform_3, window_bounds = array<i64: 2, 256>}, {pipeline_mode = #tpu.pipeline_mode<synchronous>, transform_indices = @transform_4, window_bounds = array<i64: 1, 128>}, {pipeline_mode = #tpu.pipeline_mode<synchronous>, transform_indices = @transform_5, window_bounds = array<i64: 1, 64>}, {pipeline_mode = #tpu.pipeline_mode<synchronous>, transform_indices = @transform_6, window_bounds = array<i64: 1, 256>}, {transform_indices = @transform_7, window_bounds = array<i64: 2, 128>}, {transform_indices = @transform_8, window_bounds = array<i64: 2, 64>}, {transform_indices = @transform_9, window_bounds = array<i64: 2, 256>}, {transform_indices = @transform_10, window_bounds = array<i64: 2, 256>}]} {
    %c0 = arith.constant 0 : index
    %c0_0 = arith.constant 0 : index
    %0 = vector.load %arg1[%c0, %c0_0] : memref<2x128xf32, #tpu.memory_space<vmem>>, vector<2x128xf32>
    %c0_1 = arith.constant 0 : index
    %c0_2 = arith.constant 0 : index
    %1 = vector.load %arg5[%c0_1, %c0_2] : memref<1x128xf32, #tpu.memory_space<vmem>>, vector<1x128xf32>
    %2 = vector.broadcast %1 : vector<1x128xf32> to vector<2x128xf32>
    %3 = arith.addf %0, %2 : vector<2x128xf32>
    %c0_3 = arith.constant 0 : index
    %c0_4 = arith.constant 0 : index
    %4 = vector.load %arg8[%c0_3, %c0_4] : memref<2x128xf32, #tpu.memory_space<vmem>>, vector<2x128xf32>
    tpu.vector_store %arg8[%c0_3, %c0_4], %3 {strides = array<i32>} : memref<2x128xf32, #tpu.memory_space<vmem>>, vector<2x128xf32>,
    %c0_5 = arith.constant 0 : index
    %c0_6 = arith.constant 0 : index
    %5 = vector.load %arg2[%c0_5, %c0_6] : memref<2x64xf32, #tpu.memory_space<vmem>>, vector<2x64xf32>
    %c0_7 = arith.constant 0 : index
    %c0_8 = arith.constant 0 : index
    %6 = vector.load %arg6[%c0_7, %c0_8] : memref<1x64xf32, #tpu.memory_space<vmem>>, vector<1x64xf32>
    %7 = vector.broadcast %6 : vector<1x64xf32> to vector<2x64xf32>
    %8 = arith.addf %5, %7 : vector<2x64xf32>
    %c0_9 = arith.constant 0 : index
    %c0_10 = arith.constant 0 : index
    %9 = vector.load %arg9[%c0_9, %c0_10] : memref<2x64xf32, #tpu.memory_space<vmem>>, vector<2x64xf32>
    tpu.vector_store %arg9[%c0_9, %c0_10], %8 {strides = array<i32>} : memref<2x64xf32, #tpu.memory_space<vmem>>, vector<2x64xf32>,
    %c0_11 = arith.constant 0 : index
    %c0_12 = arith.constant 0 : index
    %10 = vector.load %arg3[%c0_11, %c0_12] : memref<2x256xf32, #tpu.memory_space<vmem>>, vector<2x256xf32>
    %c0_13 = arith.constant 0 : index
    %c0_14 = arith.constant 0 : index
    %11 = vector.load %arg7[%c0_13, %c0_14] : memref<1x256xf32, #tpu.memory_space<vmem>>, vector<1x256xf32>
    %12 = vector.broadcast %11 : vector<1x256xf32> to vector<2x256xf32>
    %13 = arith.addf %10, %12 : vector<2x256xf32>
    %c0_15 = arith.constant 0 : index
    %c0_16 = arith.constant 0 : index
    %14 = vector.load %arg10[%c0_15, %c0_16] : memref<2x256xf32, #tpu.memory_space<vmem>>, vector<2x256xf32>
    tpu.vector_store %arg10[%c0_15, %c0_16], %13 {strides = array<i32>} : memref<2x256xf32, #tpu.memory_space<vmem>>, vector<2x256xf32>,
    %c0_17 = arith.constant 0 : index
    %c0_18 = arith.constant 0 : index
    %15 = vector.load %arg4[%c0_17, %c0_18] : memref<2x256xf32, #tpu.memory_space<vmem>>, vector<2x256xf32>
    %c0_19 = arith.constant 0 : index
    %c0_20 = arith.constant 0 : index
    %16 = vector.load %arg7[%c0_19, %c0_20] : memref<1x256xf32, #tpu.memory_space<vmem>>, vector<1x256xf32>
    %17 = vector.broadcast %16 : vector<1x256xf32> to vector<2x256xf32>
    %18 = arith.addf %15, %17 : vector<2x256xf32>
    %c0_21 = arith.constant 0 : index
    %c0_22 = arith.constant 0 : index
    %19 = vector.load %arg11[%c0_21, %c0_22] : memref<2x256xf32, #tpu.memory_space<vmem>>, vector<2x256xf32>
    tpu.vector_store %arg11[%c0_21, %c0_22], %18 {strides = array<i32>} : memref<2x256xf32, #tpu.memory_space<vmem>>, vector<2x256xf32>,
    return
  }
  func.func @transform_0(%arg0: i32) -> (i32, i32) {
    %c0_i32 = arith.constant 0 : i32
    %c0_i32_0 = arith.constant 0 : i32
    return %arg0, %c0_i32 : i32, i32
  }
  func.func @transform_1(%arg0: i32) -> (i32, i32) {
    %c0_i32 = arith.constant 0 : i32
    %c0_i32_0 = arith.constant 0 : i32
    return %arg0, %c0_i32 : i32, i32
  }
  func.func @transform_2(%arg0: i32) -> (i32, i32) {
    %c0_i32 = arith.constant 0 : i32
    %c0_i32_0 = arith.constant 0 : i32
    return %arg0, %c0_i32 : i32, i32
  }
  func.func @transform_3(%arg0: i32) -> (i32, i32) {
    %c0_i32 = arith.constant 0 : i32
    %c0_i32_0 = arith.constant 0 : i32
    return %arg0, %c0_i32 : i32, i32
  }
  func.func @transform_4(%arg0: i32) -> (i32, i32) {
    %c0_i32 = arith.constant 0 : i32
    %c0_i32_0 = arith.constant 0 : i32
    %c0_i32_1 = arith.constant 0 : i32
    return %c0_i32, %c0_i32_0 : i32, i32
  }
  func.func @transform_5(%arg0: i32) -> (i32, i32) {
    %c0_i32 = arith.constant 0 : i32
    %c0_i32_0 = arith.constant 0 : i32
    %c0_i32_1 = arith.constant 0 : i32
    return %c0_i32, %c0_i32_0 : i32, i32
  }
  func.func @transform_6(%arg0: i32) -> (i32, i32) {
    %c0_i32 = arith.constant 0 : i32
    %c0_i32_0 = arith.constant 0 : i32
    %c0_i32_1 = arith.constant 0 : i32
    return %c0_i32, %c0_i32_0 : i32, i32
  }
  func.func @transform_7(%arg0: i32) -> (i32, i32) {
    %c0_i32 = arith.constant 0 : i32
    %c0_i32_0 = arith.constant 0 : i32
    return %arg0, %c0_i32 : i32, i32
  }
  func.func @transform_8(%arg0: i32) -> (i32, i32) {
    %c0_i32 = arith.constant 0 : i32
    %c0_i32_0 = arith.constant 0 : i32
    return %arg0, %c0_i32 : i32, i32
  }
  func.func @transform_9(%arg0: i32) -> (i32, i32) {
    %c0_i32 = arith.constant 0 : i32
    %c0_i32_0 = arith.constant 0 : i32
    return %arg0, %c0_i32 : i32, i32
  }
  func.func @transform_10(%arg0: i32) -> (i32, i32) {
    %c0_i32 = arith.constant 0 : i32
    %c0_i32_0 = arith.constant 0 : i32
    return %arg0, %c0_i32 : i32, i32
  }
}

</mosaic_0001>

<bundles_post_ra>
// kernel: tpu_custom_call.1
= control target key start
LH: loop header
LB: loop body
LE: loop exit
PB: predicated region body
PF: predicated region fallthrough
CT: control target
= control target key end

     0   :  { %16 = vsyncpa [#allocation3], 0  ;;  %s445_s0 = inlined_call_operand.hbm [shape: f32[2,128], index: 0, kind: input, shape index: {}]   ;;  %s446_s1 = inlined_call_operand.vmem [shape: f32[2,64], index: 1, kind: input, shape index: {}]   ;;  %s447_s2 = inlined_call_operand.vmem [shape: f32[2,256], index: 2, kind: input, shape index: {}]   ;;  %s448_s3 = inlined_call_operand.vmem [shape: f32[2,256], index: 3, kind: input, shape index: {}]   ;;  %s449_s4 = inlined_call_operand.vmem [shape: f32[1,128], index: 4, kind: input, shape index: {}]   ;;  %s450_s5 = inlined_call_operand.vmem [shape: f32[1,64], index: 5, kind: input, shape index: {}]   ;;  %s451_s6 = inlined_call_operand.vmem [shape: f32[1,256], index: 6, kind: input, shape index: {}]   ;;  %s452_s7 = inlined_call_operand.hbm [shape: f32[2,128], index: 7, kind: output, shape index: {0}]   ;;  %s453_s8 = inlined_call_operand.hbm [shape: f32[2,64], index: 8, kind: output, shape index: {1}]   ;;  %s454_s9 = inlined_call_operand.hbm [shape: f32[2,256], index: 9, kind: output, shape index: {2}]   ;;  %s455_s10 = inlined_call_operand.hbm [shape: f32[2,256], index: 10, kind: output, shape index: {3}]  }
   0x1   :  { %17 = vsyncpa [#allocation4], 0 }
   0x2   :  { %18 = vsyncpa [#allocation7], 0 }
   0x3   :  { %19 = vsyncpa [#allocation10], 0  ;;  %s292_s13 = smov [#allocation2]   ;;  %s174_s17 = scalar_lea.hbm %s445_s0, 32 }
   0x4   :  { %s26_s14 = sshll.u32 %s292_s13, 4  ;;  %p175_p0 = scmp.ne.s32.totalorder %s445_s0, %s174_s17  ;;  %s27_s14 = int_to_ptr.vmem [resolvable:$true] %s26_s14 }
   0x5   :  { %p178_p1 = scmp.lt.u32.totalorder %s174_s17, %s445_s0 }
   0x7   :  { %p180_p2 = pnand %p178_p1, %p175_p0 }
   0x9   :  { %183 = shalt.err (!%p180_p2)
}
   0xa   :  { %s184_s22 = scalar_lea.vmem %s27_s14, 32  ;;  %p189_p4 = scmp.lt.s32.totalorder %s27_s14, %s27_s14 }
   0xb   :  { %p185_p3 = scmp.ne.s32.totalorder %s27_s14, %s184_s22  ;;  %p190_p5 = scmp.lt.s32.totalorder %s184_s22, %s184_s22 }
   0xd   :  { %p191_p6 = por %p190_p5, %p189_p4 }
   0xf   :  { %p192_p7 = pnand %p191_p6, %p185_p3 }
  0x11   :  { %195 = shalt.err (!%p192_p7)
}
  0x12   :  { %29 = dma.hbm_to_vmem [thread:$0]  %s445_s0, 32, %s27_s14, [#allocation3]  }
  0x13   :  { %284 = dma.done.wait [#allocation3], 32  }
  0x14   :  { %285 = vsyncadd [#allocation3], 4294967264  ;;  %v69_v0 = vlaneseq  ;;  %v293_v1 = vmov 1983009808   ;;  %s294_s25 = smov [#allocation6]   ;;  %vm64_vm0 = vcmask 517120  }
  0x15   :  { %v79_v2 = vunpack.c.l.s4 %v293_v1  ;;  %s126_s26 = sshll.u32 %s294_s25, 4  ;;  %s295_s27 = smov [#allocation5]   ;;  %v55_v7 = vld [vmem:[%s446_s1] sm:$0x3]  ;;  %v45_v9 = vld [vmem:[#allocation2] sm:$0x3]  ;;  %s127_s26 = int_to_ptr.vmem [resolvable:$true] %s126_s26 }
  0x16   :  { %v70_v3 = vshrl.u32 %v69_v0, 7  ;;  %s116_s28 = sshll.u32 %s295_s27, 4  ;;  %v167_v8 = vld [vmem:[%s450_s5] ss:$0 sm:$0xff]  ;;  %s196_s17 = scalar_lea.vmem %s127_s26, 32  ;;  %s380_s28 = int_to_ptr.vmem [resolvable:$true] %s116_s28 }
  0x17   :  { %v80_v6 = vunpack.c.0.s8 %v79_v2  ;;  %v63_v10 = vadd.f32 %v167_v8, %v55_v7  ;;  %v166_v11 = vld [vmem:[%s449_s4] ss:$0 sm:$0xff]  ;;  %s296_s4 = smov [#allocation8]   ;;  %p197_p8 = scmp.ne.s32.totalorder %s127_s26, %s196_s17 }
  0x18   :  { %v71_v4 = vsub.s32 0, %v70_v3  ;;  %v75_v5 = vsub.s32 1, %v70_v3  ;;  %v67_v12 = vld [vmem:[%s451_s6] sm:$0x3]  ;;  %v53_v13 = vadd.f32 %v166_v11, %v45_v9  ;;  %s383_s5 = sshll.u32 %s296_s4, 4  ;;  %p201_p9 = scmp.lt.s32.totalorder %s127_s26, %s127_s26  ;;  %s137_s5 = int_to_ptr.vmem [resolvable:$true] %s383_s5 }
  0x19   :  { %v83_v16 = vsub.s32 %v80_v6, %v70_v3  ;;  %v89_v17 = vld [vmem:[%s451_s6] sm:$0x3]  ;;  %65 = vst.msk [vmem:[#allocation6] sm:$0x3] %vm64_vm0, %v63_v10  ;;  %p202_p10 = scmp.lt.s32.totalorder %s196_s17, %s196_s17 }
  0x1a   :  { %v72_v14 = vrot.slane %v67_v12, %v71_v4  ;;  %v76_v15 = vrot.slane %v67_v12, %v75_v5  ;;  %v94_v18 = vrot.slane %v89_v17, %v71_v4  ;;  %v98_v19 = vrot.slane %v89_v17, %v75_v5  ;;  %54 = vst [vmem:[#allocation5] sm:$0x3] %v53_v13 }
  0x1b   :  { %p203_p11 = por %p202_p10, %p201_p9 }
  0x1c   :  { %v77_v20 = vcombine.low %v72_v14, %v76_v15 }
  0x1d   :  { %p204_p12 = pnand %p203_p11, %p197_p8 }
  0x1f   :  { %207 = shalt.err (!%p204_p12)
}
  0x20   :  { %s208_s19 = scalar_lea.hbm %s453_s8, 32 }
  0x21   :  { %p209_p13 = scmp.ne.s32.totalorder %s453_s8, %s208_s19  ;;  %p212_p0 = scmp.lt.u32.totalorder %s208_s19, %s453_s8 }
  0x23   :  { %p214_p1 = pnand %p212_p0, %p209_p13 }
  0x25   :  { %217 = shalt.err (!%p214_p1)
}
  0x26   :  { %129 = dma.vmem_to_hbm [thread:$0]  %s127_s26, 32, %s453_s8, [#allocation7]   ;;  %v66_v21 = vld [vmem:[%s447_s2] sm:$0xf]  ;;  %v99_v22 = vcombine.low %v94_v18, %v98_v19 }
  0x27   :  { %s218_s30 = scalar_lea.vmem %s380_s28, 32  ;;  %p223_p3 = scmp.lt.s32.totalorder %s380_s28, %s380_s28 }
  0x28   :  { %p219_p2 = scmp.ne.s32.totalorder %s380_s28, %s218_s30  ;;  %p224_p4 = scmp.lt.s32.totalorder %s218_s30, %s218_s30 }
  0x2a   :  { %p225_p5 = por %p224_p4, %p223_p3 }
  0x2c   :  { %p226_p6 = pnand %p225_p5, %p219_p2 }
  0x2e   :  { %229 = shalt.err (!%p226_p6)
}
  0x2f   :  { %s230_s12 = scalar_lea.hbm %s452_s7, 32 }
  0x30   :  { %p231_p7 = scmp.ne.s32.totalorder %s452_s7, %s230_s12  ;;  %p234_p8 = scmp.lt.u32.totalorder %s230_s12, %s452_s7 }
  0x32   :  { %p236_p9 = pnand %p234_p8, %p231_p7 }
  0x34   :  { %239 = shalt.err (!%p236_p9)
}
  0x35   :  { %119 = dma.vmem_to_hbm [thread:$0]  %s380_s28, 32, %s452_s7, [#allocation4]   ;;  %v84_v23 = vrot.slane %v77_v20, %v83_v16  ;;  %v88_v24 = vld [vmem:[%s448_s3] sm:$0xf]  ;;  %v106_v25 = vrot.slane %v99_v22, %v83_v16 }
  0x36   :  { %s297_s4 = smov [#allocation9]   ;;  %s240_s18 = scalar_lea.vmem %s137_s5, 64 }
  0x37   :  { %s146_s17 = sshll.u32 %s297_s4, 4  ;;  %v86_v26 = vadd.f32 %v84_v23, %v66_v21  ;;  %v108_v27 = vadd.f32 %v106_v25, %v88_v24  ;;  %p241_p10 = scmp.ne.s32.totalorder %s137_s5, %s240_s18  ;;  %s147_s17 = int_to_ptr.vmem [resolvable:$true] %s146_s17 }
  0x38   :  { %p245_p11 = scmp.lt.s32.totalorder %s137_s5, %s137_s5  ;;  %p246_p12 = scmp.lt.s32.totalorder %s240_s18, %s240_s18 }
  0x39   :  { %87 = vst [vmem:[#allocation8] sm:$0xf] %v86_v26  ;;  %109 = vst [vmem:[#allocation9] sm:$0xf] %v108_v27 }
  0x3a   :  { %p247_p13 = por %p246_p12, %p245_p11 }
  0x3c   :  { %p248_p0 = pnand %p247_p13, %p241_p10 }
  0x3e   :  { %251 = shalt.err (!%p248_p0)
}
  0x3f   :  { %s252_s3 = scalar_lea.hbm %s454_s9, 64 }
  0x40   :  { %p253_p1 = scmp.ne.s32.totalorder %s454_s9, %s252_s3  ;;  %p256_p2 = scmp.lt.u32.totalorder %s252_s3, %s454_s9 }
  0x42   :  { %p258_p3 = pnand %p256_p2, %p253_p1 }
  0x44   :  { %261 = shalt.err (!%p258_p3)
}
  0x45   :  { %139 = dma.vmem_to_hbm [thread:$0]  %s137_s5, 64, %s454_s9, [#allocation7]  }
  0x46   :  { %s262_s24 = scalar_lea.vmem %s147_s17, 64  ;;  %p267_p5 = scmp.lt.s32.totalorder %s147_s17, %s147_s17 }
  0x47   :  { %p263_p4 = scmp.ne.s32.totalorder %s147_s17, %s262_s24  ;;  %p268_p6 = scmp.lt.s32.totalorder %s262_s24, %s262_s24 }
  0x49   :  { %p269_p7 = por %p268_p6, %p267_p5 }
  0x4b   :  { %p270_p8 = pnand %p269_p7, %p263_p4 }
  0x4d   :  { %273 = shalt.err (!%p270_p8)
}
  0x4e   :  { %s274_s29 = scalar_lea.hbm %s455_s10, 64 }
  0x4f   :  { %p275_p9 = scmp.ne.s32.totalorder %s455_s10, %s274_s29  ;;  %p278_p10 = scmp.lt.u32.totalorder %s274_s29, %s455_s10 }
  0x51   :  { %p280_p11 = pnand %p278_p10, %p275_p9 }
  0x53   :  { %283 = shalt.err (!%p280_p11)
}
  0x54   :  { %149 = dma.vmem_to_hbm [thread:$0]  %s147_s17, 64, %s455_s10, [#allocation10]  }
  0x55   :  { %286 = dma.done.wait [#allocation4], 32  }
  0x56   :  { %287 = vsyncadd [#allocation4], 4294967264 }
  0x57   :  { %288 = dma.done.wait [#allocation7], 96  }
  0x58   :  { %289 = vsyncadd [#allocation7], 4294967200 }
  0x59   :  { %290 = dma.done.wait [#allocation10], 64  }
  0x5a   :  { %291 = vsyncadd [#allocation10], 4294967232 }
  0x5b   :  { %162 = vsyncpa [#allocation3], 1 }
  0x5c   :  { %163 = vsyncpa [#allocation4], 1 }
  0x5d   :  { %164 = vsyncpa [#allocation7], 1 }
  0x5e   :  { %165 = vsyncpa [#allocation10], 1 }

</bundles_post_ra>
